<compile_context>
chip_gen: v6e
topology: v6e:2x2x1
jax: 0.10.0
libtpu: 0.0.40
codegen_flags: <defaults>
</compile_context>

<pallas_src>
import functools
import math

import jax
import jax.numpy as jnp
from jax import lax
from jax.experimental import pallas as pl
from jax.experimental.pallas import tpu as pltpu

BF16 = jnp.bfloat16
F32 = jnp.float32


def _round_up(x, m):
    return ((x + m - 1) // m) * m


def _row_block(m, max_rows=256):
    # Row-independent computations: ragged last blocks are safe (stores are masked).
    return m if m <= 512 else max_rows


def _col_block(n, max_cols=1024):
    return n if n <= 2048 else max_cols


# ----------------------------------------------------------------------------
# Fused (MLP + residual) -> Linear kernel   y = (relu(x@W1+b1)@W2+b2+x) @ W3 + b3
# ----------------------------------------------------------------------------
def _fused_mlp_linear_kernel(x_ref, w1_ref, b1_ref, w2_ref, b2_ref,
                             w3_ref, b3_ref, o_ref, t_ref):
    j = pl.program_id(1)

    # Intermediate t is computed once per row block (j == 0) and kept in VMEM scratch.
    # The j axis must be "arbitrary" so the same core sweeps all column blocks.
    @pl.when(j == 0)
    def _():
        x = x_ref[...]
        hmid = jnp.dot(x.astype(BF16), w1_ref[...],
                       preferred_element_type=F32) + b1_ref[...]
        hmid = jnp.maximum(hmid, 0.0)
        t_ref[...] = jnp.dot(hmid.astype(BF16), w2_ref[...],
                             preferred_element_type=F32) + b2_ref[...] + x

    o_ref[...] = jnp.dot(t_ref[...].astype(BF16), w3_ref[...],
                         preferred_element_type=F32) + b3_ref[...]


def fused_mlp_linear(x2d, mlp_params, lin_params):
    w1, b1, w2, b2 = mlp_params
    w3, b3 = lin_params
    m, k = x2d.shape
    h1 = w1.shape[1]
    n = w3.shape[1]
    bm = _row_block(m)
    bn = _col_block(n)
    grid = (pl.cdiv(m, bm), pl.cdiv(n, bn))
    return pl.pallas_call(
        _fused_mlp_linear_kernel,
        grid=grid,
        out_shape=jax.ShapeDtypeStruct((m, n), F32),
        in_specs=[
            pl.BlockSpec((bm, k), lambda i, j: (i, 0)),
            pl.BlockSpec((k, h1), lambda i, j: (0, 0)),
            pl.BlockSpec((1, h1), lambda i, j: (0, 0)),
            pl.BlockSpec((h1, k), lambda i, j: (0, 0)),
            pl.BlockSpec((1, k), lambda i, j: (0, 0)),
            pl.BlockSpec((k, bn), lambda i, j: (0, j)),
            pl.BlockSpec((1, bn), lambda i, j: (0, j)),
        ],
        out_specs=pl.BlockSpec((bm, bn), lambda i, j: (i, j)),
        scratch_shapes=[pltpu.VMEM((bm, k), F32)],
        compiler_params=pltpu.CompilerParams(
            dimension_semantics=("parallel", "arbitrary"),
            vmem_limit_bytes=32 * 1024 * 1024),
    )(x2d,
      w1.astype(BF16), b1.reshape(1, -1).astype(F32),
      w2.astype(BF16), b2.reshape(1, -1).astype(F32),
      w3.astype(BF16), b3.reshape(1, -1).astype(F32))


# ----------------------------------------------------------------------------
# MLP + residual kernel (prefix projections)
# ----------------------------------------------------------------------------
def _mlp_residual_kernel(x_ref, w1_ref, b1_ref, w2_ref, b2_ref, o_ref):
    x = x_ref[...]
    hmid = jnp.dot(x.astype(BF16), w1_ref[...],
                   preferred_element_type=F32) + b1_ref[...]
    hmid = jnp.maximum(hmid, 0.0)
    o_ref[...] = jnp.dot(hmid.astype(BF16), w2_ref[...],
                         preferred_element_type=F32) + b2_ref[...] + x


def mlp_residual(x2d, mlp_params):
    w1, b1, w2, b2 = mlp_params
    m, k = x2d.shape
    h1 = w1.shape[1]
    bm = _row_block(m)
    return pl.pallas_call(
        _mlp_residual_kernel,
        grid=(pl.cdiv(m, bm),),
        out_shape=jax.ShapeDtypeStruct((m, k), F32),
        in_specs=[
            pl.BlockSpec((bm, k), lambda i: (i, 0)),
            pl.BlockSpec((k, h1), lambda i: (0, 0)),
            pl.BlockSpec((1, h1), lambda i: (0, 0)),
            pl.BlockSpec((h1, k), lambda i: (0, 0)),
            pl.BlockSpec((1, k), lambda i: (0, 0)),
        ],
        out_specs=pl.BlockSpec((bm, k), lambda i: (i, 0)),
        compiler_params=pltpu.CompilerParams(dimension_semantics=("parallel",)),
    )(x2d, w1.astype(BF16), b1.reshape(1, -1).astype(F32),
      w2.astype(BF16), b2.reshape(1, -1).astype(F32))


# ----------------------------------------------------------------------------
# Dense RGCN + residual, basis composition folded into the adjacency:
#   out = sum_b C_b @ (x @ B_b) + x @ W_root + bias + x,   C_b = sum_r comp[r,b] A_r
# Tiled over (output-row block, source block) with an f32 accumulator.
# ----------------------------------------------------------------------------
def _rgcn_kernel(xr_ref, xs_ref, adj_ref, basis_ref, wroot_ref, bias_ref,
                 o_ref, acc_ref, *, num_bases):
    ks = pl.program_id(1)

    @pl.when(ks == 0)
    def _():
        acc_ref[...] = jnp.zeros_like(acc_ref)

    xs = xs_ref[...].astype(BF16)
    acc = acc_ref[...]
    for b in range(num_bases):                                   # static unroll
        xb = jnp.dot(xs, basis_ref[b], preferred_element_type=F32)
        acc = acc + jnp.dot(adj_ref[b], xb.astype(BF16),
                            preferred_element_type=F32)
    acc_ref[...] = acc

    @pl.when(ks == pl.num_programs(1) - 1)
    def _():
        xr = xr_ref[...]
        o_ref[...] = (acc_ref[...]
                      + jnp.dot(xr.astype(BF16), wroot_ref[...],
                                preferred_element_type=F32)
                      + bias_ref[...] + xr)


def rgcn_residual(x, adj_comp, basis, w_root, bias):
    n, de = x.shape
    nb = basis.shape[0]
    blk = 256 if n > 512 else n
    n_pad = _round_up(n, blk)
    if n_pad != n:   # zero-pad so the source-axis reduction stays exact
        x = jnp.pad(x, ((0, n_pad - n), (0, 0)))
        adj_comp = jnp.pad(adj_comp, ((0, 0), (0, n_pad - n), (0, n_pad - n)))
    grid = (n_pad // blk, n_pad // blk)
    kernel = functools.partial(_rgcn_kernel, num_bases=nb)
    out = pl.pallas_call(
        kernel,
        grid=grid,
        out_shape=jax.ShapeDtypeStruct((n_pad, de), F32),
        in_specs=[
            pl.BlockSpec((blk, de), lambda i, k: (i, 0)),
            pl.BlockSpec((blk, de), lambda i, k: (k, 0)),
            pl.BlockSpec((nb, blk, blk), lambda i, k: (0, i, k)),
            pl.BlockSpec((nb, de, de), lambda i, k: (0, 0, 0)),
            pl.BlockSpec((de, de), lambda i, k: (0, 0)),
            pl.BlockSpec((1, de), lambda i, k: (0, 0)),
        ],
        out_specs=pl.BlockSpec((blk, de), lambda i, k: (i, 0)),
        scratch_shapes=[pltpu.VMEM((blk, de), F32)],
        compiler_params=pltpu.CompilerParams(
            dimension_semantics=("parallel", "arbitrary"),
            vmem_limit_bytes=32 * 1024 * 1024),
    )(x, x, adj_comp.astype(BF16), basis.astype(BF16),
      w_root.astype(BF16), bias.reshape(1, -1).astype(F32))
    return out[:n] if n_pad != n else out


# ----------------------------------------------------------------------------
# One GCN hop (dense normalized adjacency), optionally fusing extra row-aligned
# adds + scale into the finalize step:  out = (A @ x + sum(extras)) * scale
# ----------------------------------------------------------------------------
def _gcn_kernel(adj_ref, x_ref, *rest, num_extras, scale):
    extra_refs = rest[:num_extras]
    o_ref = rest[num_extras]
    acc_ref = rest[num_extras + 1]
    ks = pl.program_id(1)

    @pl.when(ks == 0)
    def _():
        acc_ref[...] = jnp.zeros_like(acc_ref)

    acc_ref[...] += jnp.dot(adj_ref[...], x_ref[...].astype(BF16),
                            preferred_element_type=F32)

    @pl.when(ks == pl.num_programs(1) - 1)
    def _():
        r = acc_ref[...]
        for e_ref in extra_refs:
            r = r + e_ref[...]
        o_ref[...] = r * scale


def gcn_conv(adj, x, extras=(), scale=1.0):
    n, de = x.shape
    blk = 256 if n > 512 else n
    n_pad = _round_up(n, blk)
    if n_pad != n:
        adj = jnp.pad(adj, ((0, n_pad - n), (0, n_pad - n)))
        x = jnp.pad(x, ((0, n_pad - n), (0, 0)))
        extras = tuple(jnp.pad(e, ((0, n_pad - n), (0, 0))) for e in extras)
    grid = (n_pad // blk, n_pad // blk)
    kernel = functools.partial(_gcn_kernel, num_extras=len(extras), scale=scale)
    in_specs = ([pl.BlockSpec((blk, blk), lambda i, k: (i, k)),
                 pl.BlockSpec((blk, de), lambda i, k: (k, 0))]
                + [pl.BlockSpec((blk, de), lambda i, k: (i, 0)) for _ in extras])
    out = pl.pallas_call(
        kernel,
        grid=grid,
        out_shape=jax.ShapeDtypeStruct((n_pad, de), F32),
        in_specs=in_specs,
        out_specs=pl.BlockSpec((blk, de), lambda i, k: (i, 0)),
        scratch_shapes=[pltpu.VMEM((blk, de), F32)],
        compiler_params=pltpu.CompilerParams(
            dimension_semantics=("parallel", "arbitrary"),
            vmem_limit_bytes=32 * 1024 * 1024),
    )(adj.astype(BF16), x, *extras)
    return out[:n] if n_pad != n else out


# ----------------------------------------------------------------------------
# Cross attention (whole batch folded into one grid step)
# ----------------------------------------------------------------------------
def _cross_attn_kernel(tok_ref, ent_ref, wc_ref, o_ref, *, inv_scale, output_entity):
    bb = tok_ref.shape[0]
    wc = wc_ref[...]                                             # (H, H) bf16
    for b in range(bb):                                          # static unroll
        tokb = tok_ref[b]                                        # (T, H) f32
        entb = ent_ref[b]                                        # (E, H) f32
        q = jnp.dot(tokb.astype(BF16), wc, preferred_element_type=F32)      # (T, H)
        if output_entity:
            # scores[e, t] = q[t] . ent[e] * inv_scale ; softmax over tokens (last axis)
            s = lax.dot_general(entb.astype(BF16), q.astype(BF16),
                                (((1,), (1,)), ((), ())),
                                preferred_element_type=F32) * inv_scale     # (E, T)
            p = jnp.exp(s - jnp.max(s, axis=1, keepdims=True))
            p = p * pl.reciprocal(jnp.sum(p, axis=1, keepdims=True), approx=True)
            out = jnp.dot(p.astype(BF16), tokb.astype(BF16),
                          preferred_element_type=F32) + entb               # (E, H)
        else:
            s = lax.dot_general(q.astype(BF16), entb.astype(BF16),
                                (((1,), (1,)), ((), ())),
                                preferred_element_type=F32) * inv_scale     # (T, E)
            p = jnp.exp(s - jnp.max(s, axis=1, keepdims=True))
            p = p * pl.reciprocal(jnp.sum(p, axis=1, keepdims=True), approx=True)
            out = jnp.dot(p.astype(BF16), entb.astype(BF16),
                          preferred_element_type=F32) + tokb               # (T, H)
        o_ref[b] = out


def cross_attention(tok, ent, wc, hidden_size, output_entity):
    b, t, h = tok.shape
    e = ent.shape[1]
    out_len = e if output_entity else t
    bb = b if b <= 16 else 8
    kernel = functools.partial(_cross_attn_kernel,
                               inv_scale=1.0 / float(hidden_size),
                               output_entity=output_entity)
    # TODO(synk): for long T/E add a KV-tile grid axis with an online (flash) softmax.
    return pl.pallas_call(
        kernel,
        grid=(pl.cdiv(b, bb),),
        out_shape=jax.ShapeDtypeStruct((b, out_len, h), F32),
        in_specs=[
            pl.BlockSpec((bb, t, h), lambda i: (i, 0, 0)),
            pl.BlockSpec((bb, e, h), lambda i: (i, 0, 0)),
            pl.BlockSpec((h, h), lambda i: (0, 0)),
        ],
        out_specs=pl.BlockSpec((bb, out_len, h), lambda i: (i, 0, 0)),
        compiler_params=pltpu.CompilerParams(dimension_semantics=("parallel",)),
    )(tok, ent, wc.astype(BF16))


# ----------------------------------------------------------------------------
# Pure-JAX reference (mirrors the bf16-matmul / f32-accumulate numerics)
# ----------------------------------------------------------------------------
def _mmb(a, b):
    return jnp.dot(a.astype(BF16), b.astype(BF16), preferred_element_type=F32)


def _mlp_residual_ref(x, p):
    w1, b1, w2, b2 = p
    hmid = jnp.maximum(_mmb(x, w1) + b1, 0.0)
    return _mmb(hmid, w2) + b2 + x


def _linear_ref(x, p):
    w, b = p
    return _mmb(x, w) + b


def _fused_mlp_linear_ref(x, p1, p2):
    return _linear_ref(_mlp_residual_ref(x, p1), p2)


def _rgcn_residual_ref(x, adj_comp, basis, w_root, bias):
    out = _mmb(x, w_root) + bias + x
    for b in range(basis.shape[0]):
        out = out + _mmb(adj_comp[b], _mmb(x, basis[b]))
    return out


def _gcn_conv_ref(adj, x, extras=(), scale=1.0):
    r = _mmb(adj, x)
    for e in extras:
        r = r + e
    return r * scale


def _cross_attn_ref(tok, ent, wc, hidden_size, output_entity):
    b, t, h = tok.shape
    q = _mmb(tok.reshape(-1, h), wc).reshape(b, t, h)
    attn = jnp.einsum("btk,bek->bte", q.astype(BF16), ent.astype(BF16),
                      preferred_element_type=F32) * (1.0 / hidden_size)
    if output_entity:
        w = jax.nn.softmax(attn, axis=1)
        return jnp.einsum("bte,bth->beh", w.astype(BF16), tok.astype(BF16),
                          preferred_element_type=F32) + ent
    w = jax.nn.softmax(attn, axis=2)
    return jnp.einsum("bte,beh->bth", w.astype(BF16), ent.astype(BF16),
                      preferred_element_type=F32) + tok


# ----------------------------------------------------------------------------
# Graph preprocessing (dense normalized adjacencies)
# ----------------------------------------------------------------------------
def build_rel_adj(edge_index, edge_type, n_entity, num_relations):
    # A_r[dst, src] = 1 / deg_r(dst)   (mean aggregation per relation, PyG RGCNConv)
    src, dst = edge_index[0], edge_index[1]
    a = jnp.zeros((num_relations, n_entity, n_entity), F32)
    a = a.at[edge_type, dst, src].add(1.0)
    deg = a.sum(axis=2, keepdims=True)
    return jnp.where(deg > 0, a / jnp.maximum(deg, 1.0), 0.0)


def build_gcn_adj(edge_index, n_nodes):
    # CustomGCNConv: self loops + symmetric deg^-1/2 normalization (in-degree).
    loop = jnp.arange(n_nodes)
    src = jnp.concatenate([edge_index[0], loop])
    dst = jnp.concatenate([edge_index[1], loop])
    counts = jnp.zeros((n_nodes, n_nodes), F32).at[dst, src].add(1.0)
    deg = counts.sum(axis=1)
    dinv = jnp.where(deg > 0, lax.rsqrt(jnp.maximum(deg, 1.0)), 0.0)
    return counts * dinv[:, None] * dinv[None, :]


# ----------------------------------------------------------------------------
# Parameter init (deterministic, synthetic)
# ----------------------------------------------------------------------------
def _glorot(key, shape):
    limit = math.sqrt(6.0 / (shape[-2] + shape[-1]))
    return jax.random.uniform(key, shape, F32, -limit, limit)


def _linear_init(key, in_dim, out_dim):
    k1, k2 = jax.random.split(key)
    bound = 1.0 / math.sqrt(in_dim)
    w = jax.random.uniform(k1, (in_dim, out_dim), F32, -bound, bound)
    b = jax.random.uniform(k2, (out_dim,), F32, -bound, bound)
    return w, b


def _mlp_init(key, dim, hidden_dim):
    k1, k2 = jax.random.split(key)
    return _linear_init(k1, dim, hidden_dim) + _linear_init(k2, hidden_dim, dim)


def init_mmprompt(key, cfg, edge_index, edge_type, edge_index_c):
    keys = jax.random.split(key, 16)
    h = cfg["hidden_size"]
    ht = cfg["token_hidden_size"]
    de = h // 2
    stdv = math.sqrt(6.0 / (cfg["n_entity"] + de))
    return {
        "node_embeds": jax.random.uniform(keys[0], (cfg["n_entity"], de), F32, -stdv, stdv),
        "rgcn_basis": _glorot(keys[1], (cfg["num_bases"], de, de)),
        "rgcn_comp": _glorot(keys[2], (cfg["num_relations"], cfg["num_bases"])),
        "rgcn_root": _glorot(keys[3], (de, de)),
        "rgcn_bias": jnp.zeros((de,), F32),
        "entity_proj1": _mlp_init(keys[4], de, de // 2),
        "entity_proj2": _linear_init(keys[5], de, h),
        "token_proj1": _mlp_init(keys[6], ht, ht // 2),
        "token_proj2": _linear_init(keys[7], ht, h),
        "cross_attn_w": _linear_init(keys[8], h, h)[0],
        "prompt_proj1": _mlp_init(keys[9], h, h // 2),
        "prompt_proj2": _linear_init(keys[10], h, cfg["n_layer"] * cfg["n_block"] * h),
        "rec_prefix_embeds": jax.random.normal(keys[11], (cfg["n_prefix_rec"], h)),
        "rec_prefix_proj": _mlp_init(keys[12], h, h // 2),
        "conv_prefix_embeds": jax.random.normal(keys[13], (cfg["n_prefix_conv"], h)),
        "conv_prefix_proj": _mlp_init(keys[14], h, h // 2),
        "adj_rel": build_rel_adj(edge_index, edge_type, cfg["n_entity"], cfg["num_relations"]),
        "adj_c": build_gcn_adj(edge_index_c, cfg["n_entity"]),
    }


# ----------------------------------------------------------------------------
# MMPrompt forward
# ----------------------------------------------------------------------------
def _contrastive_loss(token_rep, entity_rep, temperature=0.07):
    tn = jnp.linalg.norm(token_rep, axis=-1, keepdims=True)
    en = jnp.linalg.norm(entity_rep, axis=-1, keepdims=True)
    logits = (token_rep @ entity_rep.T) / jnp.maximum(tn * en.T, 1e-8) / temperature
    labels = jnp.arange(logits.shape[0])
    logp = jax.nn.log_softmax(logits, axis=-1)
    return -jnp.mean(logp[labels, labels])


def get_entity_embeds(params, use_pallas=True):
    x = params["node_embeds"]
    # Fold the basis composition into the adjacency: C_b = sum_r comp[r, b] * A_r
    adj_comp = jnp.einsum("rb,rij->bij", params["rgcn_comp"], params["adj_rel"])
    if use_pallas:
        ent_rgcn = rgcn_residual(x, adj_comp, params["rgcn_basis"],
                                 params["rgcn_root"], params["rgcn_bias"])
        c1 = gcn_conv(params["adj_c"], x)
        c2 = gcn_conv(params["adj_c"], c1)
        # (c1 + c2 + c3 + ent_rgcn) / 4 with c3 = A_c @ c2, fused into the last hop.
        ent = gcn_conv(params["adj_c"], c2, extras=(c1, c2, ent_rgcn), scale=0.25)
        ent = fused_mlp_linear(ent, params["entity_proj1"], params["entity_proj2"])
    else:
        ent_rgcn = _rgcn_residual_ref(x, adj_comp, params["rgcn_basis"],
                                      params["rgcn_root"], params["rgcn_bias"])
        c1 = _gcn_conv_ref(params["adj_c"], x)
        c2 = _gcn_conv_ref(params["adj_c"], c1)
        ent = _gcn_conv_ref(params["adj_c"], c2, extras=(c1, c2, ent_rgcn), scale=0.25)
        ent = _fused_mlp_linear_ref(ent, params["entity_proj1"], params["entity_proj2"])
    # TODO(synk): the ts/is GCN chains and idx_to_id bookkeeping in the PyTorch
    # get_entity_embeds are dead code (their results are never used) and are omitted.
    return ent


def mmprompt_forward(params, cfg, entity_ids=None, token_embeds=None,
                     output_entity=False, use_rec_prefix=False, use_conv_prefix=False,
                     use_pallas=True):
    h = cfg["hidden_size"]

    def _fused(x2d, p1, p2):
        return (fused_mlp_linear(x2d, p1, p2) if use_pallas
                else _fused_mlp_linear_ref(x2d, p1, p2))

    def _mlp(x2d, p):
        return mlp_residual(x2d, p) if use_pallas else _mlp_residual_ref(x2d, p)

    entity_embeds = tok = None
    batch_size = entity_len = token_len = None
    loss_cl = None

    if entity_ids is not None:
        batch_size, entity_len = entity_ids.shape
        ent_all = get_entity_embeds(params, use_pallas=use_pallas)        # (n_entity, H)
        # TODO(synk): the row gather stays an XLA jnp.take; a further optimization is
        # fusing it into cross-attention via PrefetchScalarGridSpec / pl.Element indexing.
        entity_embeds = jnp.take(ent_all, entity_ids, axis=0)             # (B, E, H)

    if token_embeds is not None:
        batch_size, token_len = token_embeds.shape[:2]
        ht = token_embeds.shape[-1]
        t2 = _fused(token_embeds.reshape(-1, ht),
                    params["token_proj1"], params["token_proj2"])
        tok = t2.reshape(batch_size, token_len, h)                        # (B, T, H)

    if entity_embeds is not None and tok is not None:
        if use_pallas:
            prompt_embeds = cross_attention(tok, entity_embeds, params["cross_attn_w"],
                                            h, output_entity)
        else:
            prompt_embeds = _cross_attn_ref(tok, entity_embeds, params["cross_attn_w"],
                                            h, output_entity)
        if output_entity:
            token_weights_embeds = prompt_embeds - entity_embeds          # == W_tok @ tok
            loss_cl = _contrastive_loss(token_weights_embeds.mean(axis=1),
                                        entity_embeds.mean(axis=1))
            prompt_len = entity_len
        else:
            prompt_len = token_len
    elif entity_embeds is not None:
        prompt_embeds, prompt_len = entity_embeds, entity_len
    else:
        prompt_embeds, prompt_len = tok, token_len

    if cfg["n_prefix_rec"] is not None and use_rec_prefix:
        prefix = _mlp(params["rec_prefix_embeds"], params["rec_prefix_proj"])
        prefix = jnp.broadcast_to(prefix[None], (batch_size,) + prefix.shape)
        prompt_embeds = jnp.concatenate([prefix, prompt_embeds], axis=1)
        prompt_len += cfg["n_prefix_rec"]
    if cfg["n_prefix_conv"] is not None and use_conv_prefix:
        prefix = _mlp(params["conv_prefix_embeds"], params["conv_prefix_proj"])
        prefix = jnp.broadcast_to(prefix[None], (batch_size,) + prefix.shape)
        prompt_embeds = jnp.concatenate([prefix, prompt_embeds], axis=1)
        prompt_len += cfg["n_prefix_conv"]

    p2 = _fused(prompt_embeds.reshape(-1, h),
                params["prompt_proj1"], params["prompt_proj2"])           # (B*P, L*Blk*H)

    n_layer, n_block, n_head = cfg["n_layer"], cfg["n_block"], cfg["n_head"]
    head_dim = h // n_head
    out = p2.reshape(batch_size, prompt_len, n_layer, n_block, n_head, head_dim)
    out = jnp.transpose(out, (2, 3, 0, 4, 1, 5))   # (L, Blk, B, n_head, P, head_dim)
    return out, loss_cl


# ----------------------------------------------------------------------------
# Main
# ----------------------------------------------------------------------------
if __name__ == "__main__":
    cfg = dict(
        hidden_size=32, token_hidden_size=64, n_head=2, n_layer=2, n_block=2,
        n_entity=16, num_relations=3, num_bases=2,
        n_prefix_rec=4, n_prefix_conv=4,
    )
    batch, entity_len, token_len = 2, 8, 16
    n_edges, n_edges_c = 48, 40

    key = jax.random.PRNGKey(0)
    (k_es, k_ed, k_et, k_cs, k_cd, k_param, k_eid, k_tok) = jax.random.split(key, 8)

    edge_index = jnp.stack([
        jax.random.randint(k_es, (n_edges,), 0, cfg["n_entity"]),
        jax.random.randint(k_ed, (n_edges,), 0, cfg["n_entity"]),
    ])
    edge_type = jax.random.randint(k_et, (n_edges,), 0, cfg["num_relations"])
    edge_index_c = jnp.stack([
        jax.random.randint(k_cs, (n_edges_c,), 0, cfg["n_entity"]),
        jax.random.randint(k_cd, (n_edges_c,), 0, cfg["n_entity"]),
    ])

    params = init_mmprompt(k_param, cfg, edge_index, edge_type, edge_index_c)

    entity_ids = jax.random.randint(k_eid, (batch, entity_len), 0, cfg["n_entity"])
    token_embeds = jax.random.normal(
        k_tok, (batch, token_len, cfg["token_hidden_size"]), F32)

    # Path 1: token-aligned prompt (output_entity=False) + rec prefix.
    out, loss = mmprompt_forward(params, cfg, entity_ids=entity_ids,
                                 token_embeds=token_embeds, output_entity=False,
                                 use_rec_prefix=True, use_conv_prefix=False,
                                 use_pallas=True)
    out = jax.block_until_ready(out)
    ref, _ = mmprompt_forward(params, cfg, entity_ids=entity_ids,
                              token_embeds=token_embeds, output_entity=False,
                              use_rec_prefix=True, use_conv_prefix=False,
                              use_pallas=False)
    ref = jax.block_until_ready(ref)
    expected = (cfg["n_layer"], cfg["n_block"], batch, cfg["n_head"],
                token_len + cfg["n_prefix_rec"], cfg["hidden_size"] // cfg["n_head"])
    assert out.shape == expected, (out.shape, expected)
    assert loss is None
    assert jnp.allclose(out, ref, rtol=2e-2, atol=2e-2), float(jnp.max(jnp.abs(out - ref)))

    # Path 2: entity-aligned prompt (output_entity=True) + conv prefix + contrastive loss.
    out2, loss2 = mmprompt_forward(params, cfg, entity_ids=entity_ids,
                                   token_embeds=token_embeds, output_entity=True,
                                   use_rec_prefix=False, use_conv_prefix=True,
                                   use_pallas=True)
    out2 = jax.block_until_ready(out2)
    loss2 = jax.block_until_ready(loss2)
    ref2, rloss2 = mmprompt_forward(params, cfg, entity_ids=entity_ids,
                                    token_embeds=token_embeds, output_entity=True,
                                    use_rec_prefix=False, use_conv_prefix=True,
                                    use_pallas=False)
    expected2 = (cfg["n_layer"], cfg["n_block"], batch, cfg["n_head"],
                 entity_len + cfg["n_prefix_conv"], cfg["hidden_size"] // cfg["n_head"])
    assert out2.shape == expected2, (out2.shape, expected2)
    assert jnp.allclose(out2, ref2, rtol=2e-2, atol=2e-2), float(jnp.max(jnp.abs(out2 - ref2)))
    assert jnp.allclose(loss2, rloss2, rtol=2e-2, atol=2e-2), (float(loss2), float(rloss2))

    # TODO(synk): true sparse scatter/gather message passing (PyG RGCNConv / CustomGCNConv)
    # is realized as dense normalized-adjacency matmuls (valid for small graphs); large
    # graphs would need a scalar-prefetch CSR-gather kernel instead.
    print("KERNEL_OK")
</pallas_src>

<mosaic_0001>
module attributes {stable_mosaic.version = 11 : i64} {
  func.func @_rgcn_kernel(%arg0: i32, %arg1: i32, %arg2: memref<16x16xf32, #tpu.memory_space<vmem>>, %arg3: memref<16x16xf32, #tpu.memory_space<vmem>>, %arg4: memref<2x16x16xbf16, #tpu.memory_space<vmem>>, %arg5: memref<2x16x16xbf16, #tpu.memory_space<vmem>>, %arg6: memref<16x16xbf16, #tpu.memory_space<vmem>>, %arg7: memref<1x16xf32, #tpu.memory_space<vmem>>, %arg8: memref<16x16xf32, #tpu.memory_space<vmem>>, %arg9: memref<16x16xf32, #tpu.memory_space<vmem>>) attributes {dimension_semantics = [#tpu.dimension_semantics<parallel>, #tpu.dimension_semantics<arbitrary>], iteration_bounds = array<i64: 1, 1>, scalar_prefetch = 0 : i64, scratch_operands = 1 : i64, tpu.core_type = #tpu.core_type<tc>, window_params = [{transform_indices = @transform_0, window_bounds = array<i64: 16, 16>}, {transform_indices = @transform_1, window_bounds = array<i64: 16, 16>}, {transform_indices = @transform_2, window_bounds = array<i64: 2, 16, 16>}, {pipeline_mode = #tpu.pipeline_mode<synchronous>, transform_indices = @transform_3, window_bounds = array<i64: 2, 16, 16>}, {pipeline_mode = #tpu.pipeline_mode<synchronous>, transform_indices = @transform_4, window_bounds = array<i64: 16, 16>}, {pipeline_mode = #tpu.pipeline_mode<synchronous>, transform_indices = @transform_5, window_bounds = array<i64: 1, 16>}, {transform_indices = @transform_6, window_bounds = array<i64: 16, 16>}]} {
    %c0_i32 = arith.constant 0 : i32
    %0 = arith.cmpi eq, %arg1, %c0_i32 : i32
    %1 = arith.extui %0 : i1 to i32
    %c0_i32_0 = arith.constant 0 : i32
    %2 = arith.cmpi ne, %1, %c0_i32_0 : i32
    scf.if %2 {
      %cst_22 = arith.constant 0.000000e+00 : f32
      %26 = vector.broadcast %cst_22 : f32 to vector<16x16xf32>
      %c0_23 = arith.constant 0 : index
      %c0_24 = arith.constant 0 : index
      %27 = vector.load %arg9[%c0_23, %c0_24] : memref<16x16xf32, #tpu.memory_space<vmem>>, vector<16x16xf32>
      tpu.vector_store %arg9[%c0_23, %c0_24], %26 {strides = array<i32>} : memref<16x16xf32, #tpu.memory_space<vmem>>, vector<16x16xf32>,
    } else {
    }
    %c0 = arith.constant 0 : index
    %c0_1 = arith.constant 0 : index
    %3 = vector.load %arg3[%c0, %c0_1] : memref<16x16xf32, #tpu.memory_space<vmem>>, vector<16x16xf32>
    %4 = arith.truncf %3 : vector<16x16xf32> to vector<16x16xbf16>
    %c0_2 = arith.constant 0 : index
    %c0_3 = arith.constant 0 : index
    %5 = vector.load %arg9[%c0_2, %c0_3] : memref<16x16xf32, #tpu.memory_space<vmem>>, vector<16x16xf32>
    %c0_4 = arith.constant 0 : index
    %c0_5 = arith.constant 0 : index
    %c0_6 = arith.constant 0 : index
    %6 = vector.load %arg5[%c0_4, %c0_5, %c0_6] : memref<2x16x16xbf16, #tpu.memory_space<vmem>>, vector<1x16x16xbf16>
    %7 = vector.shape_cast %6 : vector<1x16x16xbf16> to vector<16x16xbf16>
    %cst = arith.constant dense<0.000000e+00> : vector<16x16xf32>
    %8 = tpu.matmul %4, %7, %cst {dimension_numbers = #tpu.dot_dimension_numbers<[1], [0], [0], [1], [0, 0, 1, 1], [], []>} : vector<16x16xbf16>, vector<16x16xbf16>, vector<16x16xf32> -> vector<16x16xf32>
    %c0_7 = arith.constant 0 : index
    %c0_8 = arith.constant 0 : index
    %c0_9 = arith.constant 0 : index
    %9 = vector.load %arg4[%c0_7, %c0_8, %c0_9] : memref<2x16x16xbf16, #tpu.memory_space<vmem>>, vector<1x16x16xbf16>
    %10 = vector.shape_cast %9 : vector<1x16x16xbf16> to vector<16x16xbf16>
    %11 = arith.truncf %8 : vector<16x16xf32> to vector<16x16xbf16>
    %cst_10 = arith.constant dense<0.000000e+00> : vector<16x16xf32>
    %12 = tpu.matmul %10, %11, %cst_10 {dimension_numbers = #tpu.dot_dimension_numbers<[1], [0], [0], [1], [0, 0, 1, 1], [], []>} : vector<16x16xbf16>, vector<16x16xbf16>, vector<16x16xf32> -> vector<16x16xf32>
    %13 = arith.addf %5, %12 : vector<16x16xf32>
    %c1 = arith.constant 1 : index
    %c0_11 = arith.constant 0 : index
    %c0_12 = arith.constant 0 : index
    %14 = vector.load %arg5[%c1, %c0_11, %c0_12] : memref<2x16x16xbf16, #tpu.memory_space<vmem>>, vector<1x16x16xbf16>
    %15 = vector.shape_cast %14 : vector<1x16x16xbf16> to vector<16x16xbf16>
    %cst_13 = arith.constant dense<0.000000e+00> : vector<16x16xf32>
    %16 = tpu.matmul %4, %15, %cst_13 {dimension_numbers = #tpu.dot_dimension_numbers<[1], [0], [0], [1], [0, 0, 1, 1], [], []>} : vector<16x16xbf16>, vector<16x16xbf16>, vector<16x16xf32> -> vector<16x16xf32>
    %c1_14 = arith.constant 1 : index
    %c0_15 = arith.constant 0 : index
    %c0_16 = arith.constant 0 : index
    %17 = vector.load %arg4[%c1_14, %c0_15, %c0_16] : memref<2x16x16xbf16, #tpu.memory_space<vmem>>, vector<1x16x16xbf16>
    %18 = vector.shape_cast %17 : vector<1x16x16xbf16> to vector<16x16xbf16>
    %19 = arith.truncf %16 : vector<16x16xf32> to vector<16x16xbf16>
    %cst_17 = arith.constant dense<0.000000e+00> : vector<16x16xf32>
    %20 = tpu.matmul %18, %19, %cst_17 {dimension_numbers = #tpu.dot_dimension_numbers<[1], [0], [0], [1], [0, 0, 1, 1], [], []>} : vector<16x16xbf16>, vector<16x16xbf16>, vector<16x16xf32> -> vector<16x16xf32>
    %21 = arith.addf %13, %20 : vector<16x16xf32>
    %c0_18 = arith.constant 0 : index
    %c0_19 = arith.constant 0 : index
    %22 = vector.load %arg9[%c0_18, %c0_19] : memref<16x16xf32, #tpu.memory_space<vmem>>, vector<16x16xf32>
    tpu.vector_store %arg9[%c0_18, %c0_19], %21 {strides = array<i32>} : memref<16x16xf32, #tpu.memory_space<vmem>>, vector<16x16xf32>,
    %c0_i32_20 = arith.constant 0 : i32
    %23 = arith.cmpi eq, %arg1, %c0_i32_20 : i32
    %24 = arith.extui %23 : i1 to i32
    %c0_i32_21 = arith.constant 0 : i32
    %25 = arith.cmpi ne, %24, %c0_i32_21 : i32
    scf.if %25 {
      %c0_22 = arith.constant 0 : index
      %c0_23 = arith.constant 0 : index
      %26 = vector.load %arg2[%c0_22, %c0_23] : memref<16x16xf32, #tpu.memory_space<vmem>>, vector<16x16xf32>
      %c0_24 = arith.constant 0 : index
      %c0_25 = arith.constant 0 : index
      %27 = vector.load %arg9[%c0_24, %c0_25] : memref<16x16xf32, #tpu.memory_space<vmem>>, vector<16x16xf32>
      %28 = arith.truncf %26 : vector<16x16xf32> to vector<16x16xbf16>
      %c0_26 = arith.constant 0 : index
      %c0_27 = arith.constant 0 : index
      %29 = vector.load %arg6[%c0_26, %c0_27] : memref<16x16xbf16, #tpu.memory_space<vmem>>, vector<16x16xbf16>
      %cst_28 = arith.constant dense<0.000000e+00> : vector<16x16xf32>
      %30 = tpu.matmul %28, %29, %cst_28 {dimension_numbers = #tpu.dot_dimension_numbers<[1], [0], [0], [1], [0, 0, 1, 1], [], []>} : vector<16x16xbf16>, vector<16x16xbf16>, vector<16x16xf32> -> vector<16x16xf32>
      %31 = arith.addf %27, %30 : vector<16x16xf32>
      %c0_29 = arith.constant 0 : index
      %c0_30 = arith.constant 0 : index
      %32 = vector.load %arg7[%c0_29, %c0_30] : memref<1x16xf32, #tpu.memory_space<vmem>>, vector<1x16xf32>
      %33 = vector.broadcast %32 : vector<1x16xf32> to vector<16x16xf32>
      %34 = arith.addf %31, %33 : vector<16x16xf32>
      %35 = arith.addf %34, %26 : vector<16x16xf32>
      %c0_31 = arith.constant 0 : index
      %c0_32 = arith.constant 0 : index
      %36 = vector.load %arg8[%c0_31, %c0_32] : memref<16x16xf32, #tpu.memory_space<vmem>>, vector<16x16xf32>
      tpu.vector_store %arg8[%c0_31, %c0_32], %35 {strides = array<i32>} : memref<16x16xf32, #tpu.memory_space<vmem>>, vector<16x16xf32>,
    } else {
    }
    return
  }
  func.func @transform_0(%arg0: i32, %arg1: i32) -> (i32, i32) {
    %c0_i32 = arith.constant 0 : i32
    %c0_i32_0 = arith.constant 0 : i32
    return %arg0, %c0_i32 : i32, i32
  }
  func.func @transform_1(%arg0: i32, %arg1: i32) -> (i32, i32) {
    %c0_i32 = arith.constant 0 : i32
    %c0_i32_0 = arith.constant 0 : i32
    return %arg1, %c0_i32 : i32, i32
  }
  func.func @transform_2(%arg0: i32, %arg1: i32) -> (i32, i32, i32) {
    %c0_i32 = arith.constant 0 : i32
    %c0_i32_0 = arith.constant 0 : i32
    return %c0_i32, %arg0, %arg1 : i32, i32, i32
  }
  func.func @transform_3(%arg0: i32, %arg1: i32) -> (i32, i32, i32) {
    %c0_i32 = arith.constant 0 : i32
    %c0_i32_0 = arith.constant 0 : i32
    %c0_i32_1 = arith.constant 0 : i32
    %c0_i32_2 = arith.constant 0 : i32
    return %c0_i32, %c0_i32_0, %c0_i32_1 : i32, i32, i32
  }
  func.func @transform_4(%arg0: i32, %arg1: i32) -> (i32, i32) {
    %c0_i32 = arith.constant 0 : i32
    %c0_i32_0 = arith.constant 0 : i32
    %c0_i32_1 = arith.constant 0 : i32
    return %c0_i32, %c0_i32_0 : i32, i32
  }
  func.func @transform_5(%arg0: i32, %arg1: i32) -> (i32, i32) {
    %c0_i32 = arith.constant 0 : i32
    %c0_i32_0 = arith.constant 0 : i32
    %c0_i32_1 = arith.constant 0 : i32
    return %c0_i32, %c0_i32_0 : i32, i32
  }
  func.func @transform_6(%arg0: i32, %arg1: i32) -> (i32, i32) {
    %c0_i32 = arith.constant 0 : i32
    %c0_i32_0 = arith.constant 0 : i32
    return %arg0, %c0_i32 : i32, i32
  }
}

</mosaic_0001>

<bundles_post_ra>
// kernel: tpu_custom_call.1
= control target key start
LH: loop header
LB: loop body
LE: loop exit
PB: predicated region body
PF: predicated region fallthrough
CT: control target
= control target key end

     0   :  { %11 = vsyncpa [#allocation4], 0  ;;  %s711_s0 = inlined_call_operand.hbm [shape: f32[16,16], index: 0, kind: input, shape index: {}]   ;;  %s712_s1 = inlined_call_operand.hbm [shape: f32[16,16], index: 1, kind: input, shape index: {}]   ;;  %s713_s2 = inlined_call_operand.hbm [shape: bf16[2,16,16], index: 2, kind: input, shape index: {}]   ;;  %s714_s3 = inlined_call_operand.hbm [shape: bf16[2,16,16], index: 3, kind: input, shape index: {}]   ;;  %s715_s4 = inlined_call_operand.hbm [shape: bf16[16,16], index: 4, kind: input, shape index: {}]   ;;  %s716_s5 = inlined_call_operand.vmem [shape: f32[1,16], index: 5, kind: input, shape index: {}]   ;;  %s717_s6 = inlined_call_operand.hbm [shape: f32[16,16], index: 6, kind: output, shape index: {}]  }
   0x1   :  { %12 = vsyncpa [#allocation7], 0 }
   0x2   :  { %13 = vsyncpa [#allocation10], 0 }
   0x3   :  { %14 = vsyncpa [#allocation5], 0  ;;  %s609_s21 = smov [#allocation6]  }
   0x4   :  { %s32_s22 = sshll.u32 %s609_s21, 4  ;;  %s33_s22 = int_to_ptr.vmem [resolvable:$true] %s32_s22 }
   0x5   :  { %s489_s23 = scalar_lea.vmem %s33_s22, 256  ;;  %p494_p1 = scmp.lt.s32.totalorder %s33_s22, %s33_s22 }
   0x6   :  { %p490_p0 = scmp.ne.s32.totalorder %s33_s22, %s489_s23  ;;  %p495_p2 = scmp.lt.s32.totalorder %s489_s23, %s489_s23 }
   0x8   :  { %p496_p3 = por %p495_p2, %p494_p1 }
   0xa   :  { %p497_p4 = pnand %p496_p3, %p490_p0 }
   0xc   :  { %500 = shalt.err (!%p497_p4)
}
   0xd   :  { %s610_s24 = smov 128   ;;  %s611_s25 = smov 8  }
   0xe   :  { %38 = dma.hbm_to_vmem [thread:$0]  %s712_s1, 256, %s33_s22, [#allocation7], %s610_s24, %s610_s24, %s611_s25  }
   0xf   :  { %s612_s28 = smov [#allocation9]   ;;  %s613_s30 = smov [#allocation3]  }
  0x10   :  { %s56_s29 = sshll.u32 %s612_s28, 4  ;;  %s20_s7 = sshll.u32 %s613_s30, 4  ;;  %s57_s29 = int_to_ptr.vmem [resolvable:$true] %s56_s29  ;;  %s21_s7 = int_to_ptr.vmem [resolvable:$true] %s20_s7 }
  0x11   :  { %s509_s8 = scalar_lea.vmem %s57_s29, 256  ;;  %p514_p6 = scmp.lt.s32.totalorder %s57_s29, %s57_s29 }
  0x12   :  { %p510_p5 = scmp.ne.s32.totalorder %s57_s29, %s509_s8  ;;  %p515_p7 = scmp.lt.s32.totalorder %s509_s8, %s509_s8 }
  0x14   :  { %p516_p8 = por %p515_p7, %p514_p6 }
  0x16   :  { %p517_p9 = pnand %p516_p8, %p510_p5 }
  0x18   :  { %520 = shalt.err (!%p517_p9)
}
  0x19   :  { %s614_s9 = smov 64   ;;  %s615_s10 = smov 4  }
  0x1a   :  { %62 = dma.hbm_to_vmem [thread:$0]  %s714_s3, 256, %s57_s29, [#allocation10], %s614_s9, %s614_s9, %s615_s10  }
  0x1b   :  { %s529_s1 = scalar_lea.vmem %s21_s7, 256  ;;  %p534_p11 = scmp.lt.s32.totalorder %s21_s7, %s21_s7 }
  0x1c   :  { %p530_p10 = scmp.ne.s32.totalorder %s21_s7, %s529_s1  ;;  %p535_p12 = scmp.lt.s32.totalorder %s529_s1, %s529_s1 }
  0x1e   :  { %p536_p13 = por %p535_p12, %p534_p11 }
  0x20   :  { %p537_p0 = pnand %p536_p13, %p530_p10 }
  0x22   :  { %540 = shalt.err (!%p537_p0)
}
  0x23   :  { %26 = dma.hbm_to_vmem [thread:$0]  %s711_s0, 256, %s21_s7, [#allocation4], %s610_s24, %s610_s24, %s611_s25  }
  0x24   :  { %s616_s15 = smov [#allocation8]   ;;  %s617_s17 = smov [#allocation11]  }
  0x25   :  { %s44_s16 = sshll.u32 %s616_s15, 4  ;;  %s68_s3 = sshll.u32 %s617_s17, 4  ;;  %s45_s16 = int_to_ptr.vmem [resolvable:$true] %s44_s16  ;;  %s69_s3 = int_to_ptr.vmem [resolvable:$true] %s68_s3 }
  0x26   :  { %s549_s18 = scalar_lea.vmem %s45_s16, 256  ;;  %p554_p2 = scmp.lt.s32.totalorder %s45_s16, %s45_s16 }
  0x27   :  { %p550_p1 = scmp.ne.s32.totalorder %s45_s16, %s549_s18  ;;  %p555_p3 = scmp.lt.s32.totalorder %s549_s18, %s549_s18 }
  0x29   :  { %p556_p4 = por %p555_p3, %p554_p2 }
  0x2b   :  { %p557_p5 = pnand %p556_p4, %p550_p1 }
  0x2d   :  { %560 = shalt.err (!%p557_p5)
}
  0x2e   :  { %50 = dma.hbm_to_vmem [thread:$0]  %s713_s2, 256, %s45_s16, [#allocation7], %s614_s9, %s614_s9, %s615_s10  }
  0x2f   :  { %s569_s0 = scalar_lea.vmem %s69_s3, 128  ;;  %p574_p7 = scmp.lt.s32.totalorder %s69_s3, %s69_s3 }
  0x30   :  { %p570_p6 = scmp.ne.s32.totalorder %s69_s3, %s569_s0  ;;  %p575_p8 = scmp.lt.s32.totalorder %s569_s0, %s569_s0 }
  0x32   :  { %p576_p9 = por %p575_p8, %p574_p7 }
  0x34   :  { %p577_p10 = pnand %p576_p9, %p570_p6 }
  0x36   :  { %580 = shalt.err (!%p577_p10)
}
  0x37   :  { %74 = dma.hbm_to_vmem [thread:$0]  %s715_s4, 128, %s69_s3, [#allocation10], %s614_s9, %s614_s9, %s615_s10  }
  0x38   :  { %601 = dma.done.wait [#allocation4], 256  }
  0x39   :  { %602 = vsyncadd [#allocation4], 4294967040 }
  0x3a   :  { %603 = dma.done.wait [#allocation7], 512  }
  0x3b   :  { %604 = vsyncadd [#allocation7], 4294966784 }
  0x3c   :  { %605 = dma.done.wait [#allocation10], 384  }
  0x3d   :  { %606 = vsyncadd [#allocation10], 4294966912  ;;  %vm97_vm0 = vcmask 130048   ;;  %v618_v0 = vmov 0.0   ;;  %vm619_vm1 = vmmov 0   ;;  %v476_v1 = vld [vmem:[#allocation9] sm:$0xff]  }
  0x3e   :  { %434 = vmatprep.subr.bf16.mxu0 %v618_v0  ;;  %436 = vmatprep.mubr.msk.bf16.mxu0 %vm619_vm1, %v618_v0  ;;  %98 = vst.msk [vmem:[#allocation2] sm:$0xff] %vm97_vm0, %v618_v0  ;;  %99 = vst.msk [vmem:[#allocation2 + $0x8] sm:$0xff] %vm97_vm0, %v618_v0  ;;  %v100_v2 = vld [vmem:[#allocation6] sm:$0xff]  ;;  %v101_v3 = vld [vmem:[#allocation6 + $0x8] sm:$0xff]  ;;  %s620_s23 = smov [#allocation12]  }
  0x3f   :  { %440 = vmatprep.subr.bf16.mxu1 %v618_v0  ;;  %442 = vmatprep.mubr.msk.bf16.mxu1 %vm619_vm1, %v618_v0  ;;  %v102_v4 = vpack.c.bf16 %v101_v3, %v100_v2  ;;  %v477_v5 = vld [vmem:[#allocation9 + $0x8] sm:$0xff]   ;;  %v480_v6 = vld [vmem:[#allocation11] sm:$0xff]   ;;  %v323_v8 = vld [vmem:[#allocation3 + $0x8] sm:$0xff]  ;;  %s399_s26 = sshll.u32 %s620_s23, 4  ;;  %s400_s26 = int_to_ptr.vmem [resolvable:$true] %s399_s26 }
  0x40   :  { %435 = vmatpush3.bf16.msra.mxu0 %v476_v1  ;;  %v322_v7 = vld [vmem:[#allocation3] sm:$0xff]  ;;  %v479_v21 = vld [vmem:[#allocation8 + $0x8] sm:$0xff]   ;;  %v423_v41 = vld [vmem:[%s716_s5] ss:$0 sm:$0xff]  ;;  %s581_s27 = scalar_lea.vmem %s400_s26, 256  ;;  %p586_p12 = scmp.lt.s32.totalorder %s400_s26, %s400_s26 }
  0x41   :  { %446 = vmatprep.subr.bf16.mxu0 %v618_v0  ;;  %v326_v9 = vpack.c.bf16 %v323_v8, %v322_v7  ;;  %v478_v15 = vld [vmem:[#allocation8] sm:$0xff]   ;;  %p582_p11 = scmp.ne.s32.totalorder %s400_s26, %s581_s27  ;;  %p587_p13 = scmp.lt.s32.totalorder %s581_s27, %s581_s27 }
  0x43   :  { %437 = vmatmul.mubr.msk.bf16.vlgmr.msra.gmra.mxu0 %vm97_vm0, %v102_v4  ;;  %p588_p0 = por %p587_p13, %p586_p12 }
  0x44   :  { %447 = vmatpush3.bf16.msra.mxu0 %v477_v5  ;;  %448 = vmatprep.mubr.msk.bf16.mxu0 %vm619_vm1, %v618_v0 }
  0x45   :  { %458 = vmatprep.subr.bf16.mxu0 %v618_v0  ;;  %v103_v28 = vld [vmem:[#allocation2] sm:$0xff]  ;;  %v104_v32 = vld [vmem:[#allocation2 + $0x8] sm:$0xff]  ;;  %p589_p1 = pnand %p588_p0, %p582_p11 }
  0x4b   :  { %449 = vmatmul.mubr.msk.bf16.vlgmr.msra.gmra.mxu0 %vm97_vm0, %v102_v4 }
  0x4c   :  { %460 = vmatprep.mubr.msk.bf16.mxu0 %vm619_vm1, %v618_v0  ;;  %459 = vmatpush3.bf16.msra.mxu0 %v480_v6 }
  0x53   :  { %461 = vmatmul.mubr.msk.bf16.vlgmr.msra.gmra.mxu0 %vm97_vm0, %v326_v9 }
 0x103   :  { %v151_v10 = vpop.f32.mrf.mxu0 }
 0x105   :  { %v438_v11 = vpop.f32.mrf.mxu0 }
 0x107   :  { %v154_v12 = vpop.f32.mrf.mxu0 }
 0x108   :  { %v160_v13 = vpack.c.bf16 %v154_v12, %v151_v10 }
 0x109   :  { %v439_v14 = vpop.f32.mrf.mxu0 }
 0x10a   :  { %441 = vmatpush3.bf16.msra.mxu1 %v160_v13 }
 0x10b   :  { %v255_v16 = vpop.f32.mrf.mxu0  ;;  %452 = vmatprep.subr.bf16.mxu1 %v618_v0 }
 0x10d   :  { %443 = vmatmul.mubr.msk.bf16.vlgmr.msra.gmra.mxu1 %vm97_vm0, %v478_v15  ;;  %v450_v17 = vpop.f32.mrf.mxu0 }
 0x10e   :  { %454 = vmatprep.mubr.msk.bf16.mxu1 %vm619_vm1, %v618_v0 }
 0x10f   :  { %v258_v18 = vpop.f32.mrf.mxu0 }
 0x110   :  { %v265_v19 = vpack.c.bf16 %v258_v18, %v255_v16 }
 0x111   :  { %v451_v20 = vpop.f32.mrf.mxu0 }
 0x112   :  { %453 = vmatpush3.bf16.msra.mxu1 %v265_v19 }
 0x113   :  { %v372_v22 = vpop.f32.mrf.mxu0 }
 0x115   :  { %455 = vmatmul.mubr.msk.bf16.vlgmr.msra.gmra.mxu1 %vm97_vm0, %v479_v21  ;;  %v462_v23 = vpop.f32.mrf.mxu0 }
 0x117   :  { %v375_v24 = vpop.f32.mrf.mxu0 }
 0x119   :  { %v463_v25 = vpop.f32.mrf.mxu0 }
 0x1cd   :  { %v203_v26 = vpop.f32.mrf.mxu1 }
 0x1ce   :  { %v210_v31 = vadd.f32 %v203_v26, %v103_v28 }
 0x1cf   :  { %v444_v27 = vpop.f32.mrf.mxu1 }
 0x1d1   :  { %v206_v29 = vpop.f32.mrf.mxu1 }
 0x1d2   :  { %v211_v36 = vadd.f32 %v206_v29, %v104_v32 }
 0x1d3   :  { %v445_v30 = vpop.f32.mrf.mxu1 }
 0x1d5   :  { %v308_v33 = vpop.f32.mrf.mxu1 }
 0x1d6   :  { %v315_v34 = vadd.f32 %v308_v33, %v210_v31 }
 0x1d7   :  { %v456_v35 = vpop.f32.mrf.mxu1 }
 0x1d8   :  { %317 = vst.msk [vmem:[#allocation2] sm:$0xff] %vm97_vm0, %v315_v34 }
 0x1d9   :  { %v311_v37 = vpop.f32.mrf.mxu1 }
 0x1da   :  { %v316_v38 = vadd.f32 %v311_v37, %v211_v36 }
 0x1db   :  { %v457_v39 = vpop.f32.mrf.mxu1 }
 0x1dc   :  { %318 = vst.msk [vmem:[#allocation2 + $0x8] sm:$0xff] %vm97_vm0, %v316_v38 }
 0x1df   :  { %v324_v40 = vld [vmem:[#allocation2] sm:$0xff] }
 0x1e0   :  { %v379_v42 = vadd.f32 %v372_v22, %v324_v40 }
 0x1e2   :  { %v388_v43 = vadd.f32 %v423_v41, %v379_v42 }
 0x1e3   :  { %v325_v44 = vld [vmem:[#allocation2 + $0x8] sm:$0xff] }
 0x1e4   :  { %v390_v45 = vadd.f32 %v388_v43, %v322_v7  ;;  %v380_v46 = vadd.f32 %v375_v24, %v325_v44 }
 0x1e6   :  { %392 = vst.msk [vmem:[#allocation12] sm:$0xff] %vm97_vm0, %v390_v45  ;;  %v389_v47 = vadd.f32 %v423_v41, %v380_v46 }
 0x1e8   :  { %v391_v48 = vadd.f32 %v389_v47, %v323_v8 }
 0x1ea   :  { %393 = vst.msk [vmem:[#allocation12 + $0x8] sm:$0xff] %vm97_vm0, %v391_v48 }
 0x1eb   :  { %592 = shalt.err (!%p589_p1)
}
 0x1ec   :  { %405 = dma.vmem_to_hbm [thread:$0]  %s400_s26, 256, %s717_s6, [#allocation5], %s610_s24, %s610_s24, %s611_s25  }
 0x1ed   :  { %607 = dma.done.wait [#allocation5], 256  }
 0x1ee   :  { %608 = vsyncadd [#allocation5], 4294967040 }
 0x1ef   :  { %409 = vsyncpa [#allocation4], 1 }
 0x1f0   :  { %410 = vsyncpa [#allocation7], 1 }
 0x1f1   :  { %411 = vsyncpa [#allocation10], 1 }
 0x1f2   :  { %412 = vsyncpa [#allocation5], 1 }

</bundles_post_ra>
